<compile_context>
chip_gen: v7x
topology: tpu7x:2x2x1
jax: 0.10.0
libtpu: 0.0.40
codegen_flags: <defaults>
</compile_context>

<pallas_src>
import jax
import jax.numpy as jnp
from jax import lax
from jax.experimental import pallas as pl
from jax.experimental.pallas import tpu as pltpu


def _norm_embed_kernel(ids_ref, table_ref, out_ref, buf_ref, sem):
    # ids_ref:   (N_pad,)          int32, SMEM (scalar prefetch)
    # table_ref: (vocab, n_embd)   HBM ref (memory_space=pl.ANY) -- manual DMA
    # out_ref:   (tile, n_embd)    VMEM output tile
    # buf_ref:   (tile, n_embd)    VMEM gather scratch
    # sem:       DMA semaphore
    tile = out_ref.shape[0]
    base = pl.program_id(0) * tile

    # Issue one row-DMA per token in this tile (data-dependent gather).
    @pl.loop(0, tile)
    def _issue(r):
        tok = ids_ref[base + r]
        pltpu.make_async_copy(table_ref.at[tok], buf_ref.at[r], sem).start()

    # Wait for all row-DMAs (same-shaped descriptor -> same completion count).
    @pl.loop(0, tile)
    def _wait(r):
        pltpu.make_async_copy(table_ref.at[0], buf_ref.at[0], sem).wait()

    # Fused L2 normalization: rsqrt (EUP) * x instead of sqrt + divide (VALU).
    emb = buf_ref[...].astype(jnp.float32)
    inv = lax.rsqrt(jnp.sum(emb * emb, axis=-1, keepdims=True))
    out_ref[...] = (emb * inv).astype(out_ref.dtype)


def normalized_embedding(ids, table, *, tile=256):
    """ids: (B, T) int ids; table: (vocab, n_embd) -> (B, T, n_embd)."""
    B, T = ids.shape
    vocab, n_embd = table.shape
    N = B * T

    itemsize = jnp.dtype(table.dtype).itemsize
    # VMEM budget: out tile is double-buffered + one gather scratch tile.
    # Keep ~3 tiles under ~24 MiB so we fit the 32 MiB scoped default
    # everywhere (incl. per-core on v7x) with headroom.
    max_rows = max(8, (24 * 1024 * 1024) // (3 * n_embd * itemsize))
    tile = min(tile, max_rows)
    # Never larger than the (8-rounded) token count; keep a multiple of 8.
    tile = min(tile, ((N + 7) // 8) * 8)
    tile = max(8, (tile // 8) * 8)

    grid = (N + tile - 1) // tile
    n_pad = grid * tile

    ids_flat = ids.reshape(N).astype(jnp.int32)
    if n_pad != N:
        # Pad with token 0 (always in range); padded rows are sliced off below.
        ids_flat = jnp.pad(ids_flat, (0, n_pad - N))

    out_flat = pl.pallas_call(
        _norm_embed_kernel,
        out_shape=jax.ShapeDtypeStruct((n_pad, n_embd), table.dtype),
        grid_spec=pltpu.PrefetchScalarGridSpec(
            num_scalar_prefetch=1,                 # ids -> SMEM
            grid=(grid,),
            in_specs=[
                pl.BlockSpec(memory_space=pl.ANY),  # table stays in HBM
            ],
            out_specs=pl.BlockSpec((tile, n_embd), lambda i, ids: (i, 0)),
            scratch_shapes=[
                pltpu.VMEM((tile, n_embd), table.dtype),  # gather buffer
                pltpu.SemaphoreType.DMA,
            ],
        ),
        compiler_params=pltpu.CompilerParams(
            dimension_semantics=("parallel",)),     # megacore split on v7x
    )(ids_flat, table)

    return out_flat[:N].reshape(B, T, n_embd)


if __name__ == "__main__":
    # Small deterministic setup consistent with the module.
    vocab_size = 64
    n_embd = 32
    B, T = 2, 8

    key = jax.random.PRNGKey(0)
    k_table, k_ids = jax.random.split(key)

    # nn.Embedding default init: N(0, 1).
    table = jax.random.normal(k_table, (vocab_size, n_embd), dtype=jnp.float32)
    ids = jax.random.randint(k_ids, (B, T), 0, vocab_size, dtype=jnp.int32)

    out = normalized_embedding(ids, table)
    out = jax.block_until_ready(out)

    # Reference check in plain JAX.
    ref = table[ids]
    ref = ref / jnp.linalg.norm(ref, axis=-1, keepdims=True)
    assert out.shape == (B, T, n_embd)
    assert jnp.allclose(out, ref, atol=1e-5, rtol=1e-5)

    print("KERNEL_OK")
</pallas_src>

<mosaic_0001>
module attributes {stable_mosaic.version = 11 : i64} {
  func.func @_norm_embed_kernel(%arg0: i32, %arg1: memref<16xi32, #tpu.memory_space<smem>>, %arg2: memref<64x32xf32, #tpu.memory_space<any>>, %arg3: memref<16x32xf32, #tpu.memory_space<vmem>>, %arg4: memref<16x32xf32, #tpu.memory_space<vmem>>, %arg5: memref<!tpu.dma_semaphore, #tpu.memory_space<semaphore_mem>>) attributes {dimension_semantics = [#tpu.dimension_semantics<parallel>], iteration_bounds = array<i64: 1>, scalar_prefetch = 1 : i64, scratch_operands = 2 : i64, tpu.core_type = #tpu.core_type<tc>, window_params = [{}, {transform_indices = @transform_1, window_bounds = array<i64: 16, 32>}]} {
    %c16_i32 = arith.constant 16 : i32
    %0 = arith.muli %arg0, %c16_i32 : i32
    %c0_i32 = arith.constant 0 : i32
    %c16_i32_0 = arith.constant 16 : i32
    %1 = arith.addi %c0_i32, %c16_i32_0 : i32
    %c1_i32 = arith.constant 1 : i32
    scf.for %arg6 = %c0_i32 to %1 step %c1_i32  : i32 {
      %c1_i32_8 = arith.constant 1 : i32
      %11 = arith.muli %arg6, %c1_i32_8 : i32
      %c0_i32_9 = arith.constant 0 : i32
      %12 = arith.addi %c0_i32_9, %11 : i32
      %13 = arith.addi %0, %12 : i32
      %14 = arith.index_cast %13 : i32 to index
      %15 = memref.load %arg1[%14] : memref<16xi32, #tpu.memory_space<smem>>
      %c0_i32_10 = arith.constant 0 : i32
      %16 = tpu.memref_slice %arg2[%15, %c0_i32_10] : memref<64x32xf32, #tpu.memory_space<any>> -> memref<1x32xf32, #tpu.memory_space<any>>
      %17 = tpu.memref_squeeze %16 : memref<1x32xf32, #tpu.memory_space<any>> -> memref<32xf32, #tpu.memory_space<any>>
      %c0_i32_11 = arith.constant 0 : i32
      %18 = tpu.memref_slice %arg4[%12, %c0_i32_11] : memref<16x32xf32, #tpu.memory_space<vmem>> -> memref<1x32xf32, #tpu.memory_space<vmem>>
      %19 = tpu.memref_squeeze %18 : memref<1x32xf32, #tpu.memory_space<vmem>> -> memref<32xf32, #tpu.memory_space<vmem>>
      tpu.enqueue_dma source(%17 : memref<32xf32, #tpu.memory_space<any>>) target(%19 : memref<32xf32, #tpu.memory_space<vmem>>) target_semaphore(%arg5 : memref<!tpu.dma_semaphore, #tpu.memory_space<semaphore_mem>>)
    }
    %c16_i32_1 = arith.constant 16 : i32
    %c0_i32_2 = arith.constant 0 : i32
    %c16_i32_3 = arith.constant 16 : i32
    %2 = arith.addi %c0_i32_2, %c16_i32_3 : i32
    %c1_i32_4 = arith.constant 1 : i32
    scf.for %arg6 = %c0_i32_2 to %2 step %c1_i32_4  : i32 {
      %c0_i32_8 = arith.constant 0 : i32
      %c0_i32_9 = arith.constant 0 : i32
      %c0_i32_10 = arith.constant 0 : i32
      %11 = tpu.memref_slice %arg2[%c0_i32_8, %c0_i32_10] : memref<64x32xf32, #tpu.memory_space<any>> -> memref<1x32xf32, #tpu.memory_space<any>>
      %12 = tpu.memref_squeeze %11 : memref<1x32xf32, #tpu.memory_space<any>> -> memref<32xf32, #tpu.memory_space<any>>
      %c0_i32_11 = arith.constant 0 : i32
      %13 = tpu.memref_slice %arg4[%c0_i32_9, %c0_i32_11] : memref<16x32xf32, #tpu.memory_space<vmem>> -> memref<1x32xf32, #tpu.memory_space<vmem>>
      %14 = tpu.memref_squeeze %13 : memref<1x32xf32, #tpu.memory_space<vmem>> -> memref<32xf32, #tpu.memory_space<vmem>>
      tpu.wait_dma2 semaphore(%arg5 : memref<!tpu.dma_semaphore, #tpu.memory_space<semaphore_mem>>) src(%12 : memref<32xf32, #tpu.memory_space<any>>) dst(%14 : memref<32xf32, #tpu.memory_space<vmem>>)
    }
    %c0 = arith.constant 0 : index
    %c0_5 = arith.constant 0 : index
    %3 = vector.load %arg4[%c0, %c0_5] : memref<16x32xf32, #tpu.memory_space<vmem>>, vector<16x32xf32>
    %4 = arith.mulf %3, %3 : vector<16x32xf32>
    %cst = arith.constant dense<0.000000e+00> : vector<16xf32>
    %5 = vector.multi_reduction <add>, %4, %cst [1] : vector<16x32xf32> to vector<16xf32>
    %6 = vector.shape_cast %5 : vector<16xf32> to vector<16x1xf32>
    %7 = math.rsqrt %6 : vector<16x1xf32>
    %8 = vector.broadcast %7 : vector<16x1xf32> to vector<16x32xf32>
    %9 = arith.mulf %3, %8 : vector<16x32xf32>
    %c0_6 = arith.constant 0 : index
    %c0_7 = arith.constant 0 : index
    %10 = vector.load %arg3[%c0_6, %c0_7] : memref<16x32xf32, #tpu.memory_space<vmem>>, vector<16x32xf32>
    tpu.vector_store %arg3[%c0_6, %c0_7], %9 {strides = array<i32>} : memref<16x32xf32, #tpu.memory_space<vmem>>, vector<16x32xf32>,
    return
  }
  func.func @transform_1(%arg0: i32, %arg1: memref<16xi32, #tpu.memory_space<smem>>) -> (i32, i32) {
    %c0_i32 = arith.constant 0 : i32
    %c0_i32_0 = arith.constant 0 : i32
    return %arg0, %c0_i32 : i32, i32
  }
}

</mosaic_0001>

<bundles_post_ra>
// kernel: tpu_custom_call.1
= control target key start
LH: loop header
LB: loop body
LE: loop exit
PB: predicated region body
PF: predicated region fallthrough
CT: control target
= control target key end

     0   :  { %s260_s0 = inlined_call_operand.vmem [shape: s32[16], index: 0, kind: input, shape index: {}]   ;;  %s261_s1 = inlined_call_operand.vmem [shape: f32[64,32], index: 1, kind: input, shape index: {}]   ;;  %s262_s2 = inlined_call_operand.hbm [shape: f32[16,32], index: 2, kind: output, shape index: {}]  }
   0x1   :  { %s7_s11 = sshll.u32 %s260_s0, 4  ;;  %s8_s11 = int_to_ptr.vmem [resolvable:$true] %s7_s11 }
   0x2   :  { %s163_s12 = scalar_lea.vmem %s8_s11, 16  ;;  %p168_p1 = scmp.lt.s32.totalorder %s8_s11, %s8_s11 }
   0x3   :  { %p164_p0 = scmp.ne.s32.totalorder %s8_s11, %s163_s12  ;;  %p169_p2 = scmp.lt.s32.totalorder %s163_s12, %s163_s12 }
   0x5   :  { %p170_p3 = por %p169_p2, %p168_p1 }
   0x7   :  { %p171_p4 = pnand %p170_p3, %p164_p0 }
   0x9   :  { %174 = shalt.err (!%p171_p4)  }
   0xa   :  { %s219_s13 = smov [#allocation5]  }
   0xb   :  { %10 = dma.vmem_to_smem %s8_s11, 16, %s219_s13, [#allocation4] }
   0xc   :  { %205 = dma.done.wait [#allocation4], 16 }
   0xd   :  { %206 = vsyncadd [#allocation4], 4294967280 }
   0xe   :  { %12 = sfence }
   0xf   :  { %13 = vsyncpa [#allocation7], 0  ;;  %s211_s14 = smov 0  }
  0x10 LB: > { %s22_s15 = sld [smem:[#allocation5 + %s213_s14]]  ;;  %s24_s18 = scalar_lea.vmem [#allocation2], %s213_s14  ;;  %s213_s14 = sphi %s211_s14, %s20_s14  }
  0x16   : > { %s23_s17 = scalar_lea.vmem %s261_s1, %s22_s15 }
  0x17   : > { %v42_v0 = vld [vmem:[%s23_s17] sm:$0x1] }
  0x18   : > { %43 = vst [vmem:[%s24_s18] sm:$0x1] %v42_v0 }
  0x19   : > { %68 = vsyncadd [#allocation3], 16  ;;  %s20_s14 = sadd.s32 1, %s213_s14  }
  0x1a   : > { %p17_p5 = scmp.ge.s32.totalorder %s20_s14, 16  }
  0x1b   :  { %s215_s19 = smov (%p17_p5), 0  }
  0x1c   :  { %19 = sbr.rel (!%p17_p5) target bundleno = 16 (0x10), region = 76 }
  0x23 LB: > { %207 = dma.done.wait [#allocation3], 16  ;;  %s217_s19 = sphi %s215_s19, %s74_s19  }
  0x24   : > { %208 = vsyncadd [#allocation3], 4294967280  ;;  %s74_s19 = sadd.s32 1, %s217_s19  }
  0x25   : > { %p71_p6 = scmp.ge.s32.totalorder %s74_s19, 16  }
  0x26   :  { %v77_v1 = vld [vmem:[#allocation2] sm:$0xff] (%p71_p6)  ;;  %vm81_vm0 = vcmask (%p71_p6), 261120   ;;  %v78_v2 = vld [vmem:[#allocation2 + $0x8] sm:$0xff] (%p71_p6)  ;;  %s220_s1 = smov (%p71_p6), [#allocation6]  }
  0x27   :  { %73 = sbr.rel (!%p71_p6) target bundleno = 35 (0x23), region = 87  ;;  %v79_v3 = vmul.f32 (%p71_p6), %v77_v1, %v77_v1  ;;  %v80_v4 = vmul.f32 (%p71_p6), %v78_v2, %v78_v2  ;;  %s99_s20 = sshll.u32 (%p71_p6), %s220_s1, 4  ;;  %s100_s20 = int_to_ptr.vmem [resolvable:$true] %s99_s20 }
  0x28   :  { %s175_s21 = scalar_lea.vmem (%p71_p6), %s100_s20, 256  ;;  %p180_p8 = scmp.lt.s32.totalorder (%p71_p6), %s100_s20, %s100_s20 }
  0x29   :  { %v82_v5 = vsel (%p71_p6), %vm81_vm0, %v79_v3, 0.0  ;;  %v85_v6 = vsel (%p71_p6), %vm81_vm0, %v80_v4, 0.0  ;;  %p176_p7 = scmp.ne.s32.totalorder (%p71_p6), %s100_s20, %s175_s21  ;;  %p181_p9 = scmp.lt.s32.totalorder (%p71_p6), %s175_s21, %s175_s21 }
  0x2a   :  { %83 = vadd.xlane.f32.xlu0 (%p71_p6), %v82_v5 }
  0x2b   :  { %p182_p10 = por (%p71_p6), %p181_p9, %p180_p8 }
  0x2d   :  { %p183_p11 = pnand (%p71_p6), %p182_p10, %p176_p7 }
  0x2e   :  { %86 = vadd.xlane.f32.xlu0 %v85_v6 }
  0xb7   :  { %v84_v7 = vpop.xlane.xlu0 %83 }
  0xb8   :  { %159 = vrsqrt.f32 %v84_v7 }
  0xbb   :  { %v87_v8 = vpop.xlane.xlu0 %86 }
  0xbc   :  { %161 = vrsqrt.f32 %v87_v8 }
  0xc2   :  { %v160_v9 = vpop.eup %159 }
  0xc3   :  { %v90_v10 = vmul.f32 %v160_v9, %v77_v1 }
  0xc5   :  { %92 = vst.msk [vmem:[#allocation6] sm:$0xff] %vm81_vm0, %v90_v10 }
  0xc6   :  { %v162_v11 = vpop.eup %161 }
  0xc7   :  { %v91_v12 = vmul.f32 %v162_v11, %v78_v2 }
  0xc9   :  { %93 = vst.msk [vmem:[#allocation6 + $0x8] sm:$0xff] %vm81_vm0, %v91_v12 }
  0xca   :  { %186 = shalt.err (!%p183_p11)
}
  0xcb   :  { %s187_s24 = scalar_lea.hbm %s262_s2, 256 }
  0xcc   :  { %p188_p12 = scmp.ne.s32.totalorder %s262_s2, %s187_s24  ;;  %p191_p13 = scmp.lt.u32.totalorder %s187_s24, %s262_s2 }
  0xce   :  { %p193_p0 = pnand %p191_p13, %p188_p12 }
  0xd0   :  { %196 = shalt.err (!%p193_p0)
}
  0xd1   :  { %s221_s29 = smov 128   ;;  %s222_s30 = smov 8  }
  0xd2   :  { %105 = dma.vmem_to_hbm [thread:$0]  %s100_s20, 256, %s262_s2, [#allocation7], %s221_s29, %s221_s29, %s222_s30  }
  0xd3   :  { %209 = dma.done.wait [#allocation7], 256  }
  0xd4   :  { %210 = vsyncadd [#allocation7], 4294967040 }
  0xd5   :  { %109 = vsyncpa [#allocation7], 1 }
  0xd6   :  { %110 = vsyncmov [#allocation3] }
  0xd9   :  { %s111_s5 = vpop.sfrf %110 }
  0xda   :  { %p138_p1 = scmp.ne.s32.totalorder %s111_s5, 0 }
  0xdc   :  { %115 = shalt.err (%p138_p1)  }

</bundles_post_ra>
